<compile_context>
chip_gen: v7x
topology: tpu7x:2x2x1
jax: 0.10.0
libtpu: 0.0.40
codegen_flags: <defaults>
</compile_context>

<pallas_src>
import functools

import jax
import jax.numpy as jnp
from jax.experimental import pallas as pl
from jax.experimental.pallas import tpu as pltpu


def beholder_kernel(x_ref, w1_ref, b1_ref, w2_ref, b2_ref, o_ref, *,
                    mm_dtype, precision, fast_norm):
    # In-kernel cast (identity on the exact f32 path); keeps the wrapper from
    # re-materializing a padded/cast copy of x in HBM.
    x = x_ref[...].astype(mm_dtype)

    # --- Linear 1: img_to_hid (MXU, f32 accumulate) ---
    h = jnp.dot(x, w1_ref[...], preferred_element_type=jnp.float32,
                precision=precision) + b1_ref[...]

    # --- Dropout ---
    # TODO(synk): training-mode dropout (stochastic mask via pltpu.prng_*) not
    # emitted; nn.Dropout in eval() is the identity.

    # --- two_fc branch: relu then hid_to_hid ---
    h = jnp.maximum(h, 0.0)
    h = jnp.dot(h.astype(mm_dtype), w2_ref[...],
                preferred_element_type=jnp.float32,
                precision=precision) + b2_ref[...]

    # --- unit_norm branch: L2 norm over dim=1, keepdim, +1e-9 ---
    sumsq = jnp.sum(h * h, axis=1, keepdims=True)
    if fast_norm:
        # Single fused EUP op; eps placement differs negligibly from the
        # reference (rsqrt(ss + 1e-18) vs 1/(sqrt(ss) + 1e-9)).
        inv = jax.lax.rsqrt(sumsq + 1e-18)
    else:
        inv = 1.0 / (jnp.sqrt(sumsq) + 1e-9)   # exact PyTorch epsilon placement
    o_ref[...] = (h * inv).astype(o_ref.dtype)


def _round_up(x, m):
    return ((x + m - 1) // m) * m


def _vmem_budget_bytes():
    """~3/4 of per-core VMEM: 48 MiB on v7x (64 MiB), 96 MiB on v5e/v6e."""
    try:
        cap = pltpu.get_tpu_info().vmem_capacity_bytes
    except Exception:
        cap = 64 << 20            # conservative fallback (v7x-sized)
    return (cap * 3) // 4         # headroom for Mosaic internal scratch


def _pick_batch_tile(B, D_img, D_hid_p, mm_itemsize, out_itemsize, budget,
                     max_block_b=4096):
    # Resident operands (default double-buffered): w1, w2, b1, b2.
    weights = 2 * ((D_img + D_hid_p) * D_hid_p * mm_itemsize + 2 * D_hid_p * 4)
    # Per batch row: x tile (f32, 2-deep), out tile (2-deep), f32 intermediates.
    per_row = 2 * D_img * 4 + 2 * D_hid_p * out_itemsize + 3 * D_hid_p * 4
    tb = (budget - weights) // per_row
    tb = min(int(tb), max_block_b)
    tb = max(8, (tb // 8) * 8)
    if tb >= B:
        # Whole batch fits in one tile. Keep >= 2 "parallel" grid steps when
        # the batch allows it so v7x's two TensorCores both get work.
        tb = _round_up(pl.cdiv(B, 2), 8) if B >= 16 else _round_up(B, 8)
    return tb


def prepare_beholder_params(w1, b1, w2, b2, *, use_bf16_matmul=True):
    """Pad the hidden (lane) dim to a multiple of 128 and cast ONCE, at init.

    w1: [D_img, D_hid], b1: [1, D_hid], w2: [D_hid, D_hid], b2: [1, D_hid]
    (weights stored pre-transposed as [in, out]).
    Padding is exact: padded columns/rows are zero, so padded hidden lanes stay
    zero through relu, the second matmul and the L2 norm.
    """
    D_img, D_hid = w1.shape
    D_hid_p = _round_up(D_hid, 128)
    mm_dtype = jnp.bfloat16 if use_bf16_matmul else jnp.float32
    w1_p = jnp.zeros((D_img, D_hid_p), mm_dtype).at[:, :D_hid].set(w1.astype(mm_dtype))
    b1_p = jnp.zeros((1, D_hid_p), jnp.float32).at[:, :D_hid].set(b1.astype(jnp.float32))
    w2_p = jnp.zeros((D_hid_p, D_hid_p), mm_dtype).at[:D_hid, :D_hid].set(w2.astype(mm_dtype))
    b2_p = jnp.zeros((1, D_hid_p), jnp.float32).at[:, :D_hid].set(b2.astype(jnp.float32))
    return w1_p, b1_p, w2_p, b2_p, D_hid


def beholder_forward(img, w1_p, b1_p, w2_p, b2_p, D_hid, *,
                     approx_recip=True,
                     out_dtype=jnp.float32,
                     precision=None,
                     max_block_b=4096):
    """img: [B, D_img] f32 (raw, unpadded); prepared params from
    prepare_beholder_params. Returns [B, D_hid] in out_dtype."""
    B, D_img = img.shape
    D_hid_p = w1_p.shape[1]
    mm_dtype = w1_p.dtype
    mm_itemsize = jnp.dtype(mm_dtype).itemsize
    out_itemsize = jnp.dtype(out_dtype).itemsize

    budget = _vmem_budget_bytes()
    TB = _pick_batch_tile(B, D_img, D_hid_p, mm_itemsize, out_itemsize,
                          budget, max_block_b=max_block_b)
    grid = (pl.cdiv(B, TB),)

    flops = 2 * B * D_hid_p * (D_img + D_hid_p)
    bytes_accessed = (B * D_img * 4                              # x (f32)
                      + (D_img + D_hid_p) * D_hid_p * mm_itemsize  # w1 + w2
                      + 2 * D_hid_p * 4                          # biases
                      + B * D_hid_p * out_itemsize)              # out

    kernel = functools.partial(beholder_kernel, mm_dtype=mm_dtype,
                               precision=precision, fast_norm=approx_recip)

    out_p = pl.pallas_call(
        kernel,
        out_shape=jax.ShapeDtypeStruct((B, D_hid_p), out_dtype),
        grid=grid,
        in_specs=[
            pl.BlockSpec((TB, D_img), lambda i: (i, 0)),           # x: batch-tiled, raw f32
            pl.BlockSpec((D_img, D_hid_p), lambda i: (0, 0)),      # w1: resident
            pl.BlockSpec((1, D_hid_p), lambda i: (0, 0)),          # b1: resident
            pl.BlockSpec((D_hid_p, D_hid_p), lambda i: (0, 0)),    # w2: resident
            pl.BlockSpec((1, D_hid_p), lambda i: (0, 0)),          # b2: resident
        ],
        out_specs=pl.BlockSpec((TB, D_hid_p), lambda i: (i, 0)),
        compiler_params=pltpu.CompilerParams(
            dimension_semantics=("parallel",),
            vmem_limit_bytes=budget),
        cost_estimate=pl.CostEstimate(
            flops=flops, transcendentals=B, bytes_accessed=bytes_accessed),
    )(img, w1_p, b1_p, w2_p, b2_p)

    # Slice away lane padding of the hidden dim (batch is never padded).
    return out_p[:, :D_hid]


def reference_forward(img, w1, b1, w2, b2):
    h = img @ w1 + b1
    h = jnp.maximum(h, 0.0)
    h = h @ w2 + b2
    norm = jnp.sqrt(jnp.sum(h * h, axis=1, keepdims=True)) + 1e-9
    return h / norm


if __name__ == "__main__":
    # Small, module-consistent shapes: batch=8, D_img=64, D_hid=32.
    B, D_img, D_hid = 8, 64, 32

    key = jax.random.PRNGKey(0)
    k_img, k_w1, k_b1, k_w2, k_b2 = jax.random.split(key, 5)

    img = jax.random.normal(k_img, (B, D_img), dtype=jnp.float32)

    # Deterministic synthetic parameters (PyTorch Linear stores [out,in];
    # here we keep them pre-transposed as [in,out]).
    w1 = jax.random.normal(k_w1, (D_img, D_hid), dtype=jnp.float32) * 0.1
    b1 = jax.random.normal(k_b1, (1, D_hid), dtype=jnp.float32) * 0.1
    w2 = jax.random.normal(k_w2, (D_hid, D_hid), dtype=jnp.float32) * 0.1
    b2 = jax.random.normal(k_b2, (1, D_hid), dtype=jnp.float32) * 0.1

    ref = reference_forward(img, w1, b1, w2, b2)

    # Exact path (f32 MXU inputs, exact sqrt + divide): tight parity check.
    params_f32 = prepare_beholder_params(w1, b1, w2, b2, use_bf16_matmul=False)
    out_f32 = jax.block_until_ready(
        beholder_forward(img, *params_f32, approx_recip=False))
    assert out_f32.shape == (B, D_hid)
    assert jnp.allclose(out_f32, ref, atol=1e-5, rtol=1e-5)

    # Fast path (bf16 MXU inputs + fused EUP rsqrt): loose check.
    params_bf16 = prepare_beholder_params(w1, b1, w2, b2, use_bf16_matmul=True)
    out_fast = jax.block_until_ready(
        beholder_forward(img, *params_bf16, approx_recip=True))
    assert out_fast.shape == (B, D_hid)
    assert jnp.allclose(out_fast, ref, atol=3e-2, rtol=3e-2)

    print("KERNEL_OK")
</pallas_src>

<mosaic_0001>
module attributes {stable_mosaic.version = 11 : i64} {
  func.func @beholder_kernel(%arg0: i32, %arg1: memref<8x64xf32, #tpu.memory_space<vmem>>, %arg2: memref<64x128xf32, #tpu.memory_space<vmem>>, %arg3: memref<1x128xf32, #tpu.memory_space<vmem>>, %arg4: memref<128x128xf32, #tpu.memory_space<vmem>>, %arg5: memref<1x128xf32, #tpu.memory_space<vmem>>, %arg6: memref<8x128xf32, #tpu.memory_space<vmem>>) attributes {dimension_semantics = [#tpu.dimension_semantics<parallel>], iteration_bounds = array<i64: 1>, scalar_prefetch = 0 : i64, scratch_operands = 0 : i64, tpu.core_type = #tpu.core_type<tc>, window_params = [{transform_indices = @transform_0, window_bounds = array<i64: 8, 64>}, {pipeline_mode = #tpu.pipeline_mode<synchronous>, transform_indices = @transform_1, window_bounds = array<i64: 64, 128>}, {pipeline_mode = #tpu.pipeline_mode<synchronous>, transform_indices = @transform_2, window_bounds = array<i64: 1, 128>}, {pipeline_mode = #tpu.pipeline_mode<synchronous>, transform_indices = @transform_3, window_bounds = array<i64: 128, 128>}, {pipeline_mode = #tpu.pipeline_mode<synchronous>, transform_indices = @transform_4, window_bounds = array<i64: 1, 128>}, {transform_indices = @transform_5, window_bounds = array<i64: 8, 128>}]} {
    %c0 = arith.constant 0 : index
    %c0_0 = arith.constant 0 : index
    %0 = vector.load %arg1[%c0, %c0_0] : memref<8x64xf32, #tpu.memory_space<vmem>>, vector<8x64xf32>
    %c0_1 = arith.constant 0 : index
    %c0_2 = arith.constant 0 : index
    %1 = vector.load %arg2[%c0_1, %c0_2] : memref<64x128xf32, #tpu.memory_space<vmem>>, vector<64x128xf32>
    %cst = arith.constant dense<0.000000e+00> : vector<8x128xf32>
    %2 = tpu.matmul %0, %1, %cst {dimension_numbers = #tpu.dot_dimension_numbers<[1], [0], [0], [1], [0, 0, 1, 1], [], []>} : vector<8x64xf32>, vector<64x128xf32>, vector<8x128xf32> -> vector<8x128xf32>
    %c0_3 = arith.constant 0 : index
    %c0_4 = arith.constant 0 : index
    %3 = vector.load %arg3[%c0_3, %c0_4] : memref<1x128xf32, #tpu.memory_space<vmem>>, vector<1x128xf32>
    %4 = vector.broadcast %3 : vector<1x128xf32> to vector<8x128xf32>
    %5 = arith.addf %2, %4 : vector<8x128xf32>
    %cst_5 = arith.constant 0.000000e+00 : f32
    %6 = vector.broadcast %cst_5 : f32 to vector<8x128xf32>
    %7 = arith.maximumf %5, %6 : vector<8x128xf32>
    %c0_6 = arith.constant 0 : index
    %c0_7 = arith.constant 0 : index
    %8 = vector.load %arg4[%c0_6, %c0_7] : memref<128x128xf32, #tpu.memory_space<vmem>>, vector<128x128xf32>
    %cst_8 = arith.constant dense<0.000000e+00> : vector<8x128xf32>
    %9 = tpu.matmul %7, %8, %cst_8 {dimension_numbers = #tpu.dot_dimension_numbers<[1], [0], [0], [1], [0, 0, 1, 1], [], []>} : vector<8x128xf32>, vector<128x128xf32>, vector<8x128xf32> -> vector<8x128xf32>
    %c0_9 = arith.constant 0 : index
    %c0_10 = arith.constant 0 : index
    %10 = vector.load %arg5[%c0_9, %c0_10] : memref<1x128xf32, #tpu.memory_space<vmem>>, vector<1x128xf32>
    %11 = vector.broadcast %10 : vector<1x128xf32> to vector<8x128xf32>
    %12 = arith.addf %9, %11 : vector<8x128xf32>
    %13 = arith.mulf %12, %12 : vector<8x128xf32>
    %cst_11 = arith.constant dense<0.000000e+00> : vector<8xf32>
    %14 = vector.multi_reduction <add>, %13, %cst_11 [1] : vector<8x128xf32> to vector<8xf32>
    %15 = vector.shape_cast %14 : vector<8xf32> to vector<8x1xf32>
    %16 = math.sqrt %15 : vector<8x1xf32>
    %cst_12 = arith.constant 9.99999971E-10 : f32
    %17 = vector.broadcast %cst_12 : f32 to vector<8x1xf32>
    %18 = arith.addf %16, %17 : vector<8x1xf32>
    %cst_13 = arith.constant 1.000000e+00 : f32
    %19 = vector.broadcast %cst_13 : f32 to vector<8x1xf32>
    %20 = arith.divf %19, %18 : vector<8x1xf32>
    %21 = vector.broadcast %20 : vector<8x1xf32> to vector<8x128xf32>
    %22 = arith.mulf %12, %21 : vector<8x128xf32>
    %c0_14 = arith.constant 0 : index
    %c0_15 = arith.constant 0 : index
    %23 = vector.load %arg6[%c0_14, %c0_15] : memref<8x128xf32, #tpu.memory_space<vmem>>, vector<8x128xf32>
    tpu.vector_store %arg6[%c0_14, %c0_15], %22 {strides = array<i32>} : memref<8x128xf32, #tpu.memory_space<vmem>>, vector<8x128xf32>,
    return
  }
  func.func @transform_0(%arg0: i32) -> (i32, i32) {
    %c0_i32 = arith.constant 0 : i32
    %c0_i32_0 = arith.constant 0 : i32
    return %arg0, %c0_i32 : i32, i32
  }
  func.func @transform_1(%arg0: i32) -> (i32, i32) {
    %c0_i32 = arith.constant 0 : i32
    %c0_i32_0 = arith.constant 0 : i32
    %c0_i32_1 = arith.constant 0 : i32
    return %c0_i32, %c0_i32_0 : i32, i32
  }
  func.func @transform_2(%arg0: i32) -> (i32, i32) {
    %c0_i32 = arith.constant 0 : i32
    %c0_i32_0 = arith.constant 0 : i32
    %c0_i32_1 = arith.constant 0 : i32
    return %c0_i32, %c0_i32_0 : i32, i32
  }
  func.func @transform_3(%arg0: i32) -> (i32, i32) {
    %c0_i32 = arith.constant 0 : i32
    %c0_i32_0 = arith.constant 0 : i32
    %c0_i32_1 = arith.constant 0 : i32
    return %c0_i32, %c0_i32_0 : i32, i32
  }
  func.func @transform_4(%arg0: i32) -> (i32, i32) {
    %c0_i32 = arith.constant 0 : i32
    %c0_i32_0 = arith.constant 0 : i32
    %c0_i32_1 = arith.constant 0 : i32
    return %c0_i32, %c0_i32_0 : i32, i32
  }
  func.func @transform_5(%arg0: i32) -> (i32, i32) {
    %c0_i32 = arith.constant 0 : i32
    %c0_i32_0 = arith.constant 0 : i32
    return %arg0, %c0_i32 : i32, i32
  }
}

</mosaic_0001>

<bundles_post_ra>
// kernel: tpu_custom_call.1
= control target key start
LH: loop header
LB: loop body
LE: loop exit
PB: predicated region body
PF: predicated region fallthrough
CT: control target
= control target key end

     0   :  { %10 = vsyncpa [#allocation3], 0  ;;  %s600_s0 = inlined_call_operand.hbm [shape: f32[8,64], index: 0, kind: input, shape index: {}]   ;;  %s601_s1 = inlined_call_operand.hbm [shape: f32[64,128], index: 1, kind: input, shape index: {}]   ;;  %s602_s2 = inlined_call_operand.vmem [shape: f32[1,128], index: 2, kind: input, shape index: {}]   ;;  %s603_s3 = inlined_call_operand.hbm [shape: f32[128,128], index: 3, kind: input, shape index: {}]   ;;  %s604_s4 = inlined_call_operand.vmem [shape: f32[1,128], index: 4, kind: input, shape index: {}]   ;;  %s605_s5 = inlined_call_operand.hbm [shape: f32[8,128], index: 5, kind: output, shape index: {}]  }
   0x1   :  { %11 = vsyncpa [#allocation6], 0 }
   0x2   :  { %12 = vsyncpa [#allocation4], 0  ;;  %s501_s18 = smov [#allocation5]   ;;  %s407_s22 = scalar_lea.hbm %s601_s1, 1024 }
   0x3   :  { %s28_s19 = sshll.u32 %s501_s18, 4  ;;  %p408_p0 = scmp.ne.s32.totalorder %s601_s1, %s407_s22  ;;  %s29_s19 = int_to_ptr.vmem [resolvable:$true] %s28_s19 }
   0x4   :  { %p411_p1 = scmp.lt.u32.totalorder %s407_s22, %s601_s1 }
   0x6   :  { %p413_p2 = pnand %p411_p1, %p408_p0 }
   0x8   :  { %416 = shalt.err (!%p413_p2)
}
   0x9   :  { %s417_s27 = scalar_lea.vmem %s29_s19, 1024  ;;  %p422_p4 = scmp.lt.s32.totalorder %s29_s19, %s29_s19 }
   0xa   :  { %p418_p3 = scmp.ne.s32.totalorder %s29_s19, %s417_s27  ;;  %p423_p5 = scmp.lt.s32.totalorder %s417_s27, %s417_s27 }
   0xc   :  { %p424_p6 = por %p423_p5, %p422_p4 }
   0xe   :  { %p425_p7 = pnand %p424_p6, %p418_p3 }
  0x10   :  { %428 = shalt.err (!%p425_p7)
}
  0x11   :  { %s502_s28 = smov 128   ;;  %s503_s29 = smov 8  }
  0x12   :  { %34 = dma.hbm_to_vmem [thread:$0]  %s601_s1, 1024, %s29_s19, [#allocation6], %s502_s28, %s502_s28, %s503_s29  }
  0x13   :  { %s504_s7 = smov [#allocation2]   ;;  %s505_s9 = smov [#allocation7]  }
  0x14   :  { %s19_s8 = sshll.u32 %s504_s7, 4  ;;  %s42_s10 = sshll.u32 %s505_s9, 4  ;;  %s20_s8 = int_to_ptr.vmem [resolvable:$true] %s19_s8  ;;  %s43_s10 = int_to_ptr.vmem [resolvable:$true] %s42_s10 }
  0x15   :  { %s429_s13 = scalar_lea.hbm %s600_s0, 128 }
  0x16   :  { %p430_p8 = scmp.ne.s32.totalorder %s600_s0, %s429_s13  ;;  %p433_p9 = scmp.lt.u32.totalorder %s429_s13, %s600_s0 }
  0x18   :  { %p435_p10 = pnand %p433_p9, %p430_p8 }
  0x1a   :  { %438 = shalt.err (!%p435_p10)
}
  0x1b   :  { %s439_s1 = scalar_lea.vmem %s20_s8, 128  ;;  %p444_p12 = scmp.lt.s32.totalorder %s20_s8, %s20_s8 }
  0x1c   :  { %p440_p11 = scmp.ne.s32.totalorder %s20_s8, %s439_s1  ;;  %p445_p13 = scmp.lt.s32.totalorder %s439_s1, %s439_s1 }
  0x1e   :  { %p446_p0 = por %p445_p13, %p444_p12 }
  0x20   :  { %p447_p1 = pnand %p446_p0, %p440_p11 }
  0x22   :  { %450 = shalt.err (!%p447_p1)
}
  0x23   :  { %22 = dma.hbm_to_vmem [thread:$0]  %s600_s0, 128, %s20_s8, [#allocation3]  }
  0x24   :  { %s451_s22 = scalar_lea.hbm %s603_s3, 2048 }
  0x25   :  { %p452_p2 = scmp.ne.s32.totalorder %s603_s3, %s451_s22  ;;  %p455_p3 = scmp.lt.u32.totalorder %s451_s22, %s603_s3 }
  0x27   :  { %p457_p4 = pnand %p455_p3, %p452_p2 }
  0x29   :  { %460 = shalt.err (!%p457_p4)
}
  0x2a   :  { %s461_s27 = scalar_lea.vmem %s43_s10, 2048  ;;  %p466_p6 = scmp.lt.s32.totalorder %s43_s10, %s43_s10 }
  0x2b   :  { %p462_p5 = scmp.ne.s32.totalorder %s43_s10, %s461_s27  ;;  %p467_p7 = scmp.lt.s32.totalorder %s461_s27, %s461_s27 }
  0x2d   :  { %p468_p8 = por %p467_p7, %p466_p6 }
  0x2f   :  { %p469_p9 = pnand %p468_p8, %p462_p5 }
  0x31   :  { %472 = shalt.err (!%p469_p9)
}
  0x32   :  { %48 = dma.hbm_to_vmem [thread:$0]  %s603_s3, 2048, %s43_s10, [#allocation6], %s502_s28, %s502_s28, %s503_s29  }
  0x33   :  { %495 = dma.done.wait [#allocation3], 128  }
  0x34   :  { %496 = vsyncadd [#allocation3], 4294967168 }
  0x35   :  { %497 = dma.done.wait [#allocation6], 3072  }
  0x36   :  { %498 = vsyncadd [#allocation6], 4294964224  ;;  %v506_v0 = vmov 0.0|0.0   ;;  %vm507_vm0 = vmmov 0   ;;  %v508_v1 = vmov 0.0   ;;  %v61_v2 = vld [vmem:[#allocation5] sm:$0xff] }
  0x37   :  { %358 = vmatprep.subr.bf16.mxu0 %v506_v0  ;;  %320 = vmatprep.mubr.msk.f32.mxu0 %vm507_vm0, %v508_v1  ;;  %v62_v3 = vld [vmem:[#allocation5 + $0x8] sm:$0xff]  ;;  %v63_v4 = vld [vmem:[#allocation5 + $0x10] sm:$0xff]  ;;  %v64_v6 = vld [vmem:[#allocation5 + $0x18] sm:$0xff]  ;;  %vm76_vm1 = vcmask 523264  }
  0x38   :  { %370 = vmatprep.subr.bf16.mxu1 %v506_v0  ;;  %355 = vmatprep.mubr.msk.f32.mxu1 %vm507_vm0, %v508_v1  ;;  %v359_v5 = vpack.c.bf16 %v62_v3, %v61_v2  ;;  %v362_v7 = vpack.c.bf16 %v64_v6, %v63_v4  ;;  %v151_v8 = vld [vmem:[#allocation7] sm:$0xff]  ;;  %v152_v9 = vld [vmem:[#allocation7 + $0x8] sm:$0xff]  ;;  %v153_v10 = vld [vmem:[#allocation7 + $0x10] sm:$0xff] }
  0x39   :  { %v65_v11 = vld [vmem:[#allocation5 + $0x20] sm:$0xff]  ;;  %v66_v12 = vld [vmem:[#allocation5 + $0x28] sm:$0xff]  ;;  %v371_v13 = vpack.c.bf16 %v152_v9, %v151_v8  ;;  %v154_v14 = vld [vmem:[#allocation7 + $0x18] sm:$0xff] }
  0x3a   :  { %360 = vmatpush3.bf16.msra.mxu0 %v359_v5  ;;  %v374_v15 = vpack.c.bf16 %v154_v14, %v153_v10  ;;  %v365_v16 = vpack.c.bf16 %v66_v12, %v65_v11  ;;  %v155_v17 = vld [vmem:[#allocation7 + $0x20] sm:$0xff]  ;;  %v156_v18 = vld [vmem:[#allocation7 + $0x28] sm:$0xff]  ;;  %v67_v19 = vld [vmem:[#allocation5 + $0x30] sm:$0xff] }
  0x3b   :  { %361 = vmatprep.subr.bf16.mxu0 %v506_v0  ;;  %372 = vmatpush3.bf16.msra.mxu1 %v371_v13  ;;  %v68_v20 = vld [vmem:[#allocation5 + $0x38] sm:$0xff]  ;;  %v377_v21 = vpack.c.bf16 %v156_v18, %v155_v17  ;;  %v157_v23 = vld [vmem:[#allocation7 + $0x30] sm:$0xff]  ;;  %v159_v27 = vld [vmem:[#allocation7 + $0x40] sm:$0xff] }
  0x3c   :  { %373 = vmatprep.subr.bf16.mxu1 %v506_v0  ;;  %v368_v22 = vpack.c.bf16 %v68_v20, %v67_v19  ;;  %v158_v24 = vld [vmem:[#allocation7 + $0x38] sm:$0xff]  ;;  %v160_v28 = vld [vmem:[#allocation7 + $0x48] sm:$0xff]  ;;  %v161_v30 = vld [vmem:[#allocation7 + $0x50] sm:$0xff] }
  0x3d   :  { %v380_v25 = vpack.c.bf16 %v158_v24, %v157_v23  ;;  %v60_v26 = vld [vmem:[#allocation2] sm:$0xff]  ;;  %v383_v29 = vpack.c.bf16 %v160_v28, %v159_v27  ;;  %v163_v33 = vld [vmem:[#allocation7 + $0x60] sm:$0xff]  ;;  %v164_v34 = vld [vmem:[#allocation7 + $0x68] sm:$0xff] }
  0x3e   :  { %363 = vmatpush3.bf16.msra.mxu0 %v362_v7  ;;  %v162_v31 = vld [vmem:[#allocation7 + $0x58] sm:$0xff]  ;;  %v389_v35 = vpack.c.bf16 %v164_v34, %v163_v33  ;;  %v165_v36 = vld [vmem:[#allocation7 + $0x70] sm:$0xff] }
  0x3f   :  { %364 = vmatprep.subr.bf16.mxu0 %v506_v0  ;;  %375 = vmatpush3.bf16.msra.mxu1 %v374_v15  ;;  %v386_v32 = vpack.c.bf16 %v162_v31, %v161_v30  ;;  %v166_v37 = vld [vmem:[#allocation7 + $0x78] sm:$0xff] }
  0x40   :  { %376 = vmatprep.subr.bf16.mxu1 %v506_v0  ;;  %v392_v38 = vpack.c.bf16 %v166_v37, %v165_v36  ;;  %v275_v39 = vld [vmem:[%s602_s2] ss:$0 sm:$0xff]  ;;  %s509_s2 = smov [#allocation8]  }
  0x41   :  { %v277_v44 = vld [vmem:[%s604_s4] ss:$0 sm:$0xff]  ;;  %s265_s7 = sshll.u32 %s509_s2, 4  ;;  %s266_s7 = int_to_ptr.vmem [resolvable:$true] %s265_s7 }
  0x42   :  { %366 = vmatpush3.bf16.msra.mxu0 %v365_v16  ;;  %s473_s4 = scalar_lea.vmem %s266_s7, 128  ;;  %p478_p11 = scmp.lt.s32.totalorder %s266_s7, %s266_s7 }
  0x43   :  { %367 = vmatprep.subr.bf16.mxu0 %v506_v0  ;;  %378 = vmatpush3.bf16.msra.mxu1 %v377_v21  ;;  %p474_p10 = scmp.ne.s32.totalorder %s266_s7, %s473_s4  ;;  %p479_p12 = scmp.lt.s32.totalorder %s473_s4, %s473_s4 }
  0x44   :  { %379 = vmatprep.subr.bf16.mxu1 %v506_v0 }
  0x45   :  { %p480_p13 = por %p479_p12, %p478_p11 }
  0x46   :  { %369 = vmatpush3.bf16.msra.mxu0 %v368_v22 }
  0x47   :  { %381 = vmatpush3.bf16.msra.mxu1 %v380_v25  ;;  %p481_p0 = pnand %p480_p13, %p474_p10 }
  0x48   :  { %382 = vmatprep.subr.bf16.mxu1 %v506_v0 }
  0x49   :  { %321 = vmatmul.mubr.msk.f32.vlgmr.msra.gmra.mrb[0].mxu0 %vm76_vm1, %v60_v26 }
  0x4b   :  { %384 = vmatpush3.bf16.msra.mxu1 %v383_v29 }
  0x4c   :  { %385 = vmatprep.subr.bf16.mxu1 %v506_v0 }
  0x4f   :  { %387 = vmatpush3.bf16.msra.mxu1 %v386_v32 }
  0x50   :  { %388 = vmatprep.subr.bf16.mxu1 %v506_v0 }
  0x53   :  { %390 = vmatpush3.bf16.msra.mxu1 %v389_v35 }
  0x54   :  { %391 = vmatprep.subr.bf16.mxu1 %v506_v0 }
  0x57   :  { %393 = vmatpush3.bf16.msra.mxu1 %v392_v38 }
 0x11c   :  { %v146_v40 = vpop.f32.mrb[0].mxu0 }
 0x11d   :  { %v147_v41 = vadd.f32 %v275_v39, %v146_v40  ;;  %v322_v42 = vpop.f32.mrb[1].mxu0 }
 0x11f   :  { %v150_v43 = vmax.f32 %v147_v41, 0.0 }
 0x121   :  { %356 = vmatmul.mubr.f32.vlgmr.msra.gmra.mrb[0].mxu1 %v150_v43 }
 0x1f4   :  { %v240_v45 = vpop.f32.mrb[0].mxu1 }
 0x1f5   :  { %v241_v46 = vadd.f32 %v277_v44, %v240_v45  ;;  %v357_v47 = vpop.f32.mrb[1].mxu1 }
 0x1f7   :  { %v244_v48 = vmul.f32 %v241_v46, %v241_v46 }
 0x1f9   :  { %245 = vadd.xlane.f32.xlu0 %v244_v48 }
 0x286   :  { %v246_v49 = vpop.xlane.xlu0 %245 }
 0x287   :  { %403 = vrsqrt.f32 %v246_v49  ;;  %vm249_vm2 = vcmp.eq.f32.partialorder %v246_v49, inf  ;;  %v252_v52 = vand.u32 2147483648, %v246_v49  ;;  %vm251_vm3 = vcmp.eq.f32.partialorder %v246_v49, 0.0 }
 0x291   :  { %v404_v50 = vpop.eup %403 }
 0x292   :  { %v248_v51 = vmul.f32 %v404_v50, %v246_v49 }
 0x294   :  { %v250_v53 = vsel %vm249_vm2, %v246_v49, %v248_v51 }
 0x295   :  { %v253_v54 = vsel %vm251_vm3, %v252_v52, %v250_v53 }
 0x296   :  { %v254_v55 = vadd.f32 1e-09, %v253_v54 }
 0x298   :  { %405 = vrcp.f32 %v254_v55 }
 0x2a2   :  { %v406_v56 = vpop.eup %405 }
 0x2a3   :  { %v257_v57 = vmul.f32 %v406_v56, %v241_v46 }
 0x2a5   :  { %258 = vst [vmem:[#allocation8] sm:$0xff] %v257_v57 }
 0x2a6   :  { %484 = shalt.err (!%p481_p0)
}
 0x2a7   :  { %s485_s10 = scalar_lea.hbm %s605_s5, 128 }
 0x2a8   :  { %p486_p1 = scmp.ne.s32.totalorder %s605_s5, %s485_s10  ;;  %p489_p2 = scmp.lt.u32.totalorder %s485_s10, %s605_s5 }
 0x2aa   :  { %p491_p3 = pnand %p489_p2, %p486_p1 }
 0x2ac   :  { %494 = shalt.err (!%p491_p3)
}
 0x2ad   :  { %268 = dma.vmem_to_hbm [thread:$0]  %s266_s7, 128, %s605_s5, [#allocation4]  }
 0x2ae   :  { %499 = dma.done.wait [#allocation4], 128  }
 0x2af   :  { %500 = vsyncadd [#allocation4], 4294967168 }
 0x2b0   :  { %272 = vsyncpa [#allocation3], 1 }
 0x2b1   :  { %273 = vsyncpa [#allocation6], 1 }
 0x2b2   :  { %274 = vsyncpa [#allocation4], 1 }

</bundles_post_ra>
